<compile_context>
chip_gen: v6e
topology: v6e:2x2x1
jax: 0.10.0
libtpu: 0.0.40
codegen_flags: <defaults>
</compile_context>

<pallas_src>
import functools

import jax
import jax.numpy as jnp
from jax.experimental import pallas as pl
from jax.experimental.pallas import tpu as pltpu


def _rmsnorm_kernel(x_ref, g_ref, o_ref, *, eps):
    # x_ref: (TM, D) tile ; g_ref: (1, D) gamma*sqrt(D) in f32 ; o_ref: (TM, D)
    x = x_ref[...].astype(jnp.float32)
    # Sum of squares along the lane axis (XLU reduce), one scalar per row.
    sumsq = jnp.sum(x * x, axis=-1, keepdims=True)           # (TM, 1)
    # 1 / max(||x||, eps) == rsqrt(max(sumsq, eps^2))  -> EUP, own VLIW slot.
    inv = jax.lax.rsqrt(jnp.maximum(sumsq, eps * eps))        # (TM, 1)
    g = g_ref[...]                                            # (1, D), scale pre-folded
    o_ref[...] = ((x * inv) * g).astype(o_ref.dtype)


def _choose_row_tile(rows, dim, itemsize):
    """Pick a row-tile size: ~2 MiB per buffer, sublane-aligned, >=2 grid steps
    whenever the row count allows it."""
    # Sublane packing multiple: 8 for 4-byte, 16 for 2-byte, 32 for 1-byte dtypes.
    sub = {4: 8, 2: 16, 1: 32}.get(itemsize, 8)
    row_bytes = dim * itemsize
    target_tile_bytes = 2 * 1024 * 1024  # ~2 MiB/buffer -> ~8 MiB steady-state VMEM
    tm = max(sub, (target_tile_bytes // max(row_bytes, 1)) // sub * sub)
    if rows > sub:
        # Cap the tile so the grid has at least 2 steps (v7x dual-TC / pipelining).
        half = -(-rows // 2)
        half_rounded = max(sub, -(-half // sub) * sub)
        tm = min(tm, half_rounded)
    else:
        tm = sub
    return int(tm), int(sub)


def rms_norm(x, gamma, *, eps=1e-12):
    """RMSNorm forward matching the PyTorch module exactly.

    x: (..., dim), gamma: (dim,)
    """
    dim = x.shape[-1]
    scale = float(dim) ** 0.5

    orig_shape = x.shape
    x2d = x.reshape(-1, dim)
    rows = x2d.shape[0]
    itemsize = jnp.dtype(x.dtype).itemsize

    tm, _sub = _choose_row_tile(rows, dim, itemsize)

    # Non-divisible row counts: let Pallas mask the trailing partial block
    # (out-of-bounds stores are dropped; RMSNorm is row-independent, so the
    # garbage rows computed in that block never affect valid output rows).
    grid = (pl.cdiv(rows, tm),)

    # Pre-fold the sqrt(dim) scale into gamma (tiny vector, free in the wrapper).
    g2d = (gamma.astype(jnp.float32) * scale).reshape(1, dim)

    kernel = functools.partial(_rmsnorm_kernel, eps=eps)

    rows_padded = grid[0] * tm
    cost = pl.CostEstimate(
        flops=4 * rows_padded * dim,
        transcendentals=rows_padded,
        bytes_accessed=2 * rows * dim * itemsize + dim * 4,
    )

    out2d = pl.pallas_call(
        kernel,
        out_shape=jax.ShapeDtypeStruct((rows, dim), x.dtype),
        grid_spec=pltpu.PrefetchScalarGridSpec(
            num_scalar_prefetch=0,
            grid=grid,
            in_specs=[
                pl.BlockSpec((tm, dim), lambda i: (i, 0)),   # x tile
                pl.BlockSpec((1, dim), lambda i: (0, 0)),    # gamma*scale (replicated)
            ],
            out_specs=pl.BlockSpec((tm, dim), lambda i: (i, 0)),
        ),
        compiler_params=pltpu.CompilerParams(
            dimension_semantics=("parallel",),
        ),
        cost_estimate=cost,
    )(x2d, g2d)

    return out2d.reshape(orig_shape)


def rms_norm_ref(x, gamma, eps=1e-12):
    """Pure-JAX reference replicating torch.nn.functional.normalize semantics."""
    dim = x.shape[-1]
    scale = float(dim) ** 0.5
    norm = jnp.sqrt(jnp.sum(jnp.square(x.astype(jnp.float32)), axis=-1, keepdims=True))
    y = x / jnp.maximum(norm, eps)
    return (y * scale * gamma).astype(x.dtype)


if __name__ == "__main__":
    key = jax.random.PRNGKey(0)

    batch, seq, hidden = 2, 8, 32
    x = jax.random.normal(key, (batch, seq, hidden), dtype=jnp.float32)

    # Deterministic parameter init: module's __init__ sets gamma = ones(dim).
    gamma = jnp.ones((hidden,), dtype=jnp.float32)

    out = rms_norm(x, gamma)
    out = jax.block_until_ready(out)

    ref = rms_norm_ref(x, gamma)
    assert out.shape == x.shape
    assert jnp.allclose(out, ref, atol=1e-5, rtol=1e-5), (
        f"max abs err {jnp.max(jnp.abs(out - ref))}"
    )

    print("KERNEL_OK")
</pallas_src>

<mosaic_0001>
module attributes {stable_mosaic.version = 11 : i64} {
  func.func @_rmsnorm_kernel(%arg0: i32, %arg1: memref<8x32xf32, #tpu.memory_space<vmem>>, %arg2: memref<1x32xf32, #tpu.memory_space<vmem>>, %arg3: memref<8x32xf32, #tpu.memory_space<vmem>>) attributes {dimension_semantics = [#tpu.dimension_semantics<parallel>], iteration_bounds = array<i64: 2>, scalar_prefetch = 0 : i64, scratch_operands = 0 : i64, tpu.core_type = #tpu.core_type<tc>, window_params = [{transform_indices = @transform_0, window_bounds = array<i64: 8, 32>}, {pipeline_mode = #tpu.pipeline_mode<synchronous>, transform_indices = @transform_1, window_bounds = array<i64: 1, 32>}, {transform_indices = @transform_2, window_bounds = array<i64: 8, 32>}]} {
    %c0 = arith.constant 0 : index
    %c0_0 = arith.constant 0 : index
    %0 = vector.load %arg1[%c0, %c0_0] : memref<8x32xf32, #tpu.memory_space<vmem>>, vector<8x32xf32>
    %1 = arith.mulf %0, %0 : vector<8x32xf32>
    %cst = arith.constant dense<0.000000e+00> : vector<8xf32>
    %2 = vector.multi_reduction <add>, %1, %cst [1] : vector<8x32xf32> to vector<8xf32>
    %3 = vector.shape_cast %2 : vector<8xf32> to vector<8x1xf32>
    %cst_1 = arith.constant 1.000000e-24 : f32
    %4 = vector.broadcast %cst_1 : f32 to vector<8x1xf32>
    %5 = arith.maximumf %3, %4 : vector<8x1xf32>
    %6 = math.rsqrt %5 : vector<8x1xf32>
    %c0_2 = arith.constant 0 : index
    %c0_3 = arith.constant 0 : index
    %7 = vector.load %arg2[%c0_2, %c0_3] : memref<1x32xf32, #tpu.memory_space<vmem>>, vector<1x32xf32>
    %8 = vector.broadcast %6 : vector<8x1xf32> to vector<8x32xf32>
    %9 = arith.mulf %0, %8 : vector<8x32xf32>
    %10 = vector.broadcast %7 : vector<1x32xf32> to vector<8x32xf32>
    %11 = arith.mulf %9, %10 : vector<8x32xf32>
    %c0_4 = arith.constant 0 : index
    %c0_5 = arith.constant 0 : index
    %12 = vector.load %arg3[%c0_4, %c0_5] : memref<8x32xf32, #tpu.memory_space<vmem>>, vector<8x32xf32>
    tpu.vector_store %arg3[%c0_4, %c0_5], %11 {strides = array<i32>} : memref<8x32xf32, #tpu.memory_space<vmem>>, vector<8x32xf32>,
    return
  }
  func.func @transform_0(%arg0: i32) -> (i32, i32) {
    %c0_i32 = arith.constant 0 : i32
    %c0_i32_0 = arith.constant 0 : i32
    return %arg0, %c0_i32 : i32, i32
  }
  func.func @transform_1(%arg0: i32) -> (i32, i32) {
    %c0_i32 = arith.constant 0 : i32
    %c0_i32_0 = arith.constant 0 : i32
    %c0_i32_1 = arith.constant 0 : i32
    return %c0_i32, %c0_i32_0 : i32, i32
  }
  func.func @transform_2(%arg0: i32) -> (i32, i32) {
    %c0_i32 = arith.constant 0 : i32
    %c0_i32_0 = arith.constant 0 : i32
    return %arg0, %c0_i32 : i32, i32
  }
}

</mosaic_0001>

<bundles_post_ra>
// kernel: tpu_custom_call.1
= control target key start
LH: loop header
LB: loop body
LE: loop exit
PB: predicated region body
PF: predicated region fallthrough
CT: control target
= control target key end

     0   :  { %7 = vsyncpa [#allocation3], 0  ;;  %s579_s0 = inlined_call_operand.hbm [shape: f32[16,32], index: 0, kind: input, shape index: {}]   ;;  %s580_s1 = inlined_call_operand.vmem [shape: f32[1,32], index: 1, kind: input, shape index: {}]   ;;  %s581_s2 = inlined_call_operand.hbm [shape: f32[16,32], index: 2, kind: output, shape index: {}]  }
   0x1   :  { %9 = vsyncpa [#allocation3 + $0x1], 0 }
   0x2   :  { %10 = vsyncpa [#allocation4], 0 }
   0x3   :  { %12 = vsyncpa [#allocation4 + $0x1], 0  ;;  %s433_s9 = smov 0   ;;  %s435_s10 = smov 0  }
   0x4   :  { %s437_s11 = smov 0   ;;  %s439_s12 = smov 0  }
   0x5 LB: > { %s454_s13 = sadd.s32 4294967295, %s414_s12   ;;  %s261_s14 = sadd.s32 4294967294, %s414_s12   ;;  %s414_s12 = sphi %s439_s12, %s598_s12   ;;  %s410_s11 = sphi %s437_s11, %s597_s11   ;;  %s406_s10 = sphi %s435_s10, %s596_s10   ;;  %s402_s9 = sphi %s433_s9, %s595_s9  }
   0x6   : > { %s458_s15 = sadd.s32 1, %s414_s12   ;;  %s25_s16 = sadd.s32 1, %s410_s11 }
   0x7   : > { %s22_s17 = ssub.s32 %s414_s12, %s458_s15  ;;  %p32_p0 = scmp.ne.s32.totalorder %s410_s11, %s406_s10 }
   0x8   : > { %p23_p1 = scmp.eq.s32.totalorder %s22_s17, 0  ;;  %p33_p2 = scmp.eq.s32.totalorder %s414_s12, 0 }
   0x9   : > { %p38_p3 = scmp.ne.s32.totalorder %s406_s10, %s402_s9  ;;  %p39_p4 = scmp.eq.s32.totalorder %s454_s13, 0 }
   0xa   : > { %s470_s18 = scalar_select %p23_p1, %s410_s11, %s25_s16  }
   0xb   : > { %p472_p5 = por %p33_p2, %p32_p0  ;;  %p476_p6 = por %p39_p4, %p38_p3 }
   0xc   : > { %p83_p7 = scmp.eq.s32.totalorder %s454_s13, 1  ;;  %p89_p8 = scmp.eq.s32.totalorder %s261_s14, 1 }
   0xd   : > { %s585_s20 = scalar_select %p476_p6, 1, 0 }
   0xe   : > { %p286_p10 = scmp.lt.s32.totalorder %s414_s12, 2  ;;  %p483_p11 = por %p83_p7, %p32_p0 }
   0xf   : > { %p487_p12 = por %p89_p8, %p38_p3  ;;  %s112_s23 = sand.u32 1, %s410_s11  }
  0x10   : > { %s586_s21 = scalar_select %p483_p11, 1, 0 }
  0x11   : > { %s587_s22 = scalar_select %p487_p12, 1, 0 }
  0x12   : > { %s265_s24 = sshll.u32 %s414_s12, 7  ;;  %s264_s25 = sshll.u32 %s112_s23, 3 }
  0x13   : > { %s496_s28 = scalar_lea.hbm %s579_s0, %s265_s24  ;;  %s116_s29 = scalar_lea.vmem [#allocation2], %s264_s25 }
  0x14   : > { %s123_s30 = sshll.u32 %s116_s29, 4  ;;  %p500_p13 = pnand %p286_p10, %p472_p5  ;;  %s504_s30 = int_to_ptr.vmem [resolvable:$true] %s123_s30 }
  0x15   : > { %s113_s4 = scalar_lea.sflag [#allocation3], %s112_s23  ;;  %s322_s5 = scalar_lea.hbm %s496_s28, 128 }
  0x16   : > { %p323_p2 = scmp.ne.s32.totalorder %s496_s28, %s322_s5  ;;  %p324_p3 = pneg %p500_p13 }
  0x17   : > { %s327_s8 = scalar_lea.hbm %s579_s0, 256  ;;  %p328_p5 = scmp.lt.s32.totalorder %s496_s28, %s579_s0 }
  0x18   : > { %p325_p4 = pnand %p324_p3, %p323_p2  ;;  %p329_p8 = scmp.lt.s32.totalorder %s327_s8, %s322_s5 }
  0x1a   : > { %p326_p7 = pneg %p325_p4  ;;  %p330_p10 = por %p329_p8, %p328_p5 }
  0x1c   : > { %p331_p9 = pnand %p330_p10, %p326_p7 }
  0x1e   : > { %334 = shalt.err (!%p331_p9)
}
  0x1f   : > { %s335_s17 = scalar_lea.vmem %s504_s30, 128  ;;  %s416_s19 = smov [#allocation2]  }
  0x20   : > { %p336_p0 = scmp.ne.s32.totalorder %s504_s30, %s335_s17  ;;  %s340_s23 = sshll.u32 %s416_s19, 4  ;;  %s341_s23 = int_to_ptr.vmem [resolvable:$false] %s340_s23 }
  0x21   : > { %s342_s24 = scalar_lea.vmem %s341_s23, 256  ;;  %p343_p4 = scmp.lt.s32.totalorder %s504_s30, %s341_s23 }
  0x22   : > { %p338_p1 = pnand %p336_p0, %p324_p3  ;;  %p344_p12 = scmp.lt.s32.totalorder %s342_s24, %s335_s17 }
  0x24   : > { %p339_p2 = pneg %p338_p1  ;;  %p345_p11 = por %p344_p12, %p343_p4 }
  0x26   : > { %p346_p6 = pnand %p345_p11, %p339_p2 }
  0x28   : > { %349 = shalt.err (!%p346_p6)
}
  0x29   : > { %281 = dma.hbm_to_vmem [thread:$0]  (!%p500_p13), %s496_s28, 128, %s504_s30, %s113_s4  }
  0x2a   : > { %p589_p9 = scmp.lt.s32.totalorder %s414_s12, 3  ;;  %p590_p7 = scmp.ge.s32.totalorder %s414_s12, 1 }
  0x2c   : > { %p129_p0 = pnand %p590_p7, %p589_p9 }
  0x2d   : > { %s531_s25 = sand.u32 (!%p129_p0), 1, %s406_s10   ;;  %p591_p6 = scmp.ne.s32.totalorder (!%p129_p0), %s585_s20, 0 }
  0x2e   : > { %132 = sbr.rel (%p129_p0) target bundleno = 227 (0xe3), region = 28  ;;  %s267_s26 = sshll.u32 (!%p129_p0), %s531_s25, 3 }
  0x2f   : > { %s135_s27 = scalar_lea.sflag (!%p129_p0), [#allocation3], %s531_s25  ;;  %s138_s29 = scalar_lea.vmem (!%p129_p0), [#allocation2], %s267_s26 }
  0x33   : > { %393 = dma.done.wait (%p591_p6), %s135_s27, 128  }
  0x34   : > { %395 = vsyncadd (%p591_p6), %s135_s27, 4294967168  ;;  %v159_v0 = vld [vmem:[%s138_s29] sm:$0xff]  ;;  %vm161_vm0 = vcmask 261120   ;;  %s271_s3 = sshll.u32 %s454_s13, 7  ;;  %s158_s20 = scalar_lea.vmem [#allocation5], %s267_s26 }
  0x35   : > { %v160_v1 = vmul.f32 %v159_v0, %v159_v0  ;;  %v269_v6 = vld [vmem:[%s580_s1] ss:$0 sm:$0xff]  ;;  %s191_s4 = sshll.u32 %s158_s20, 4  ;;  %s189_s7 = scalar_lea.hbm %s581_s2, %s271_s3  ;;  %s192_s4 = int_to_ptr.vmem [resolvable:$true] %s191_s4 }
  0x36   : > { %s178_s8 = scalar_lea.sflag [#allocation4], %s531_s25  ;;  %s350_s14 = scalar_lea.vmem %s192_s4, 128 }
  0x37   : > { %v162_v2 = vsel %vm161_vm0, %v160_v1, 0.0  ;;  %p351_p11 = scmp.ne.s32.totalorder %s192_s4, %s350_s14  ;;  %p592_p12 = scmp.ne.s32.totalorder %s586_s21, 0 }
  0x38   : > { %163 = vadd.xlane.f32.xlu0 %v162_v2  ;;  %s417_s16 = smov [#allocation5]  }
  0x39   : > { %p352_p13 = pnand %p351_p11, %p592_p12  ;;  %s354_s17 = sshll.u32 %s417_s16, 4  ;;  %s355_s17 = int_to_ptr.vmem [resolvable:$false] %s354_s17 }
  0x3a   : > { %s356_s13 = scalar_lea.vmem %s355_s17, 256  ;;  %p357_p3 = scmp.lt.s32.totalorder %s192_s4, %s355_s17 }
  0x3b   : > { %p353_p1 = pneg %p352_p13  ;;  %p358_p5 = scmp.lt.s32.totalorder %s356_s13, %s350_s14 }
  0x3d   : > { %p359_p8 = por %p358_p5, %p357_p3 }
  0x3f   : > { %p360_p10 = pnand %p359_p8, %p353_p1 }
  0xc1   : > { %v164_v3 = vpop.xlane.xlu0 %163 }
  0xc2   : > { %v165_v4 = vmax.f32 %v164_v3, 1e-24 }
  0xc4   : > { %320 = vrsqrt.f32 %v165_v4 }
  0xd1   : > { %v321_v5 = vpop.eup %320 }
  0xd2   : > { %v168_v7 = vmul.f32 %v321_v5, %v159_v0 }
  0xd4   : > { %v175_v8 = vmul.f32 %v269_v6, %v168_v7 }
  0xd6   : > { %176 = vst.msk [vmem:[%s158_s20] sm:$0xff] %vm161_vm0, %v175_v8 }
  0xd7   : > { %363 = shalt.err (!%p360_p10)
}
  0xd8   : > { %s364_s19 = scalar_lea.hbm %s189_s7, 128  ;;  %s368_s25 = scalar_lea.hbm %s581_s2, 256 }
  0xd9   : > { %p365_p2 = scmp.ne.s32.totalorder %s189_s7, %s364_s19  ;;  %p369_p7 = scmp.lt.s32.totalorder %s189_s7, %s581_s2 }
  0xda   : > { %p370_p0 = scmp.lt.s32.totalorder %s368_s25, %s364_s19 }
  0xdb   : > { %p366_p4 = pnand %p365_p2, %p592_p12 }
  0xdc   : > { %p371_p6 = por %p370_p0, %p369_p7 }
  0xdd   : > { %p367_p9 = pneg %p366_p4 }
  0xdf   : > { %p372_p11 = pnand %p371_p6, %p367_p9 }
  0xe1   : > { %375 = shalt.err (!%p372_p11)
}
  0xe2   : > { %276 = dma.vmem_to_hbm [thread:$0]  (%p592_p12), %s192_s4, 128, %s189_s7, %s178_s8  }
  0xe3 PF: > { %s203_s29 = sand.u32 1, %s402_s9   ;;  %p593_p13 = scmp.ne.s32.totalorder %s587_s22, 0 }
  0xe4   : > { %p594_p1 = scmp.ge.s32.totalorder %s414_s12, 2  ;;  %s204_s28 = scalar_lea.sflag [#allocation4], %s203_s29 }
  0xe6   : > { %p283_p3 = pnand %p594_p1, %p593_p13 }
  0xe8   : > { %p284_p5 = pneg %p283_p3 }
  0xea   : > { %397 = dma.done.wait (%p284_p5), %s204_s28, 128  }
  0xeb   : > { %399 = vsyncadd (%p284_p5), %s204_s28, 4294967168  ;;  %p15_p8 = scmp.ge.s32.totalorder %s458_s15, 4   ;;  %s595_s9 = smov %s406_s10 }
  0xec   : > { %s596_s10 = smov %s410_s11  ;;  %s597_s11 = smov %s470_s18 }
  0xed   : > { %s598_s12 = smov %s458_s15  ;;  %17 = sbr.rel (!%p15_p8) target bundleno = 5 (0x5), region = 73 }
  0xf2   :  { %209 = vsyncpa [#allocation3], 1 }
  0xf3   :  { %211 = vsyncpa [#allocation3 + $0x1], 1 }
  0xf4   :  { %212 = vsyncpa [#allocation4], 1 }
  0xf5   :  { %214 = vsyncpa [#allocation4 + $0x1], 1 }

</bundles_post_ra>
